<compile_context>
chip_gen: v6e
topology: v6e:2x2x1
jax: 0.10.0
libtpu: 0.0.40
codegen_flags: <defaults>
</compile_context>

<pallas_src>
import jax
import jax.numpy as jnp
from jax.experimental import pallas as pl
from jax.experimental.pallas import tpu as pltpu


def _convt1x1_fused_kernel(w_ref, x_ref, o_ref):
    # w_ref: (Cout, Cin)   x_ref: (1, Cin, T)   o_ref: (1, Cout, T)
    # 1x1 ConvTranspose2d (stride=1, pad=0, no bias) is a pure channel matmul:
    #   y[co, p] = sum_ci weight[ci, co] * x[ci, p]
    y = jnp.dot(w_ref[...], x_ref[0], preferred_element_type=jnp.float32)
    # relu(where(y>0, y, -0.6*y)) == max(y, -0.6*y): both branches are >= 0,
    # so the trailing relu is the identity.
    o_ref[0] = jnp.maximum(y, y * -0.6).astype(o_ref.dtype)


def convt1x1_fused(x_nchw: jax.Array, weight: jax.Array, *, thw_max: int = 2048) -> jax.Array:
    """Fused 1x1 ConvTranspose2d + where/relu tail.

    x_nchw : (N, Cin, H, W) float32
    weight : (Cin, Cout, 1, 1) float32  (PyTorch ConvTranspose2d weight layout)
    returns: (N, Cout, H, W) float32
    """
    n, cin, h, w = x_nchw.shape
    cout = weight.shape[1]
    hw = h * w

    # (Cin, Cout, 1, 1) -> (Cout, Cin); tiny, negligible cost.
    w_t = jnp.transpose(weight.reshape(cin, cout), (1, 0))

    # Native layout, free reshape: (N, Cin, H, W) -> (N, Cin, H*W).
    x3 = x_nchw.reshape(n, cin, hw)

    # Lane (last-dim) tile:
    #  * small HW: take the whole thing in one block (full-dim block is legal
    #    regardless of 128-alignment) -> single HW grid step, no padding.
    #  * large HW: 2048-wide tile (multiple of 128); the trailing partial block
    #    is handled by Pallas (OOB reads unused, OOB writes masked).
    if hw <= thw_max:
        thw = hw
    else:
        thw = thw_max

    grid = (n, pl.cdiv(hw, thw))

    cost = pl.CostEstimate(
        flops=2 * n * cout * cin * hw,
        transcendentals=0,
        bytes_accessed=4 * (n * cin * hw + n * cout * hw + cin * cout),
    )

    out3 = pl.pallas_call(
        _convt1x1_fused_kernel,
        out_shape=jax.ShapeDtypeStruct((n, cout, hw), jnp.float32),
        grid_spec=pltpu.PrefetchScalarGridSpec(
            num_scalar_prefetch=0,
            grid=grid,
            in_specs=[
                # Weight block is constant across the grid; Pallas skips the
                # repeated DMA since the block index never changes.
                pl.BlockSpec((cout, cin), lambda b, j: (0, 0)),
                # One batch image x one lane tile of HW.
                pl.BlockSpec((1, cin, thw), lambda b, j: (b, 0, j)),
            ],
            out_specs=pl.BlockSpec((1, cout, thw), lambda b, j: (b, 0, j)),
        ),
        compiler_params=pltpu.CompilerParams(
            dimension_semantics=("parallel", "parallel"),
        ),
        cost_estimate=cost,
    )(w_t, x3)

    return out3.reshape(n, cout, h, w)


def reference(x_nchw, weight):
    cin, cout = weight.shape[0], weight.shape[1]
    w2d = weight.reshape(cin, cout)
    y = jnp.einsum("nchw,cd->ndhw", x_nchw, w2d)
    l4 = jnp.where(y > 0, y, y * -0.6)
    return jnp.maximum(l4, 0.0)


if __name__ == "__main__":
    key = jax.random.PRNGKey(0)
    kx, kw = jax.random.split(key)

    # Channel dims match the module (Cin=113, Cout=97); small batch/spatial.
    N, CIN, H, W = 2, 113, 13, 17
    COUT = 97

    x = jax.random.normal(kx, (N, CIN, H, W), dtype=jnp.float32)
    weight = (jax.random.normal(kw, (CIN, COUT, 1, 1), dtype=jnp.float32)
              * (1.0 / jnp.sqrt(CIN)))

    out = convt1x1_fused(x, weight)
    out = jax.block_until_ready(out)

    ref = reference(x, weight)
    assert out.shape == (N, COUT, H, W), out.shape
    assert jnp.allclose(out, ref, atol=1e-4, rtol=1e-4), float(
        jnp.max(jnp.abs(out - ref)))

    print("KERNEL_OK")
</pallas_src>

<mosaic_0001>
module attributes {stable_mosaic.version = 11 : i64} {
  func.func @_convt1x1_fused_kernel(%arg0: i32, %arg1: i32, %arg2: memref<97x113xf32, #tpu.memory_space<vmem>>, %arg3: memref<1x113x221xf32, #tpu.memory_space<vmem>>, %arg4: memref<1x97x221xf32, #tpu.memory_space<vmem>>) attributes {dimension_semantics = [#tpu.dimension_semantics<parallel>, #tpu.dimension_semantics<parallel>], iteration_bounds = array<i64: 2, 1>, scalar_prefetch = 0 : i64, scratch_operands = 0 : i64, tpu.core_type = #tpu.core_type<tc>, window_params = [{pipeline_mode = #tpu.pipeline_mode<synchronous>, transform_indices = @transform_0, window_bounds = array<i64: 97, 113>}, {transform_indices = @transform_1, window_bounds = array<i64: 1, 113, 221>}, {transform_indices = @transform_2, window_bounds = array<i64: 1, 97, 221>}]} {
    %c0 = arith.constant 0 : index
    %c0_0 = arith.constant 0 : index
    %0 = vector.load %arg2[%c0, %c0_0] : memref<97x113xf32, #tpu.memory_space<vmem>>, vector<97x113xf32>
    %c0_1 = arith.constant 0 : index
    %c0_2 = arith.constant 0 : index
    %c0_3 = arith.constant 0 : index
    %1 = vector.load %arg3[%c0_1, %c0_2, %c0_3] : memref<1x113x221xf32, #tpu.memory_space<vmem>>, vector<1x113x221xf32>
    %2 = vector.shape_cast %1 : vector<1x113x221xf32> to vector<113x221xf32>
    %cst = arith.constant dense<0.000000e+00> : vector<97x221xf32>
    %3 = tpu.matmul %0, %2, %cst {dimension_numbers = #tpu.dot_dimension_numbers<[1], [0], [0], [1], [0, 0, 1, 1], [], []>} : vector<97x113xf32>, vector<113x221xf32>, vector<97x221xf32> -> vector<97x221xf32>
    %cst_4 = arith.constant -6.000000e-01 : f32
    %4 = vector.broadcast %cst_4 : f32 to vector<97x221xf32>
    %5 = arith.mulf %3, %4 : vector<97x221xf32>
    %6 = arith.maximumf %3, %5 : vector<97x221xf32>
    %c0_5 = arith.constant 0 : index
    %c0_6 = arith.constant 0 : index
    %c0_7 = arith.constant 0 : index
    %7 = vector.load %arg4[%c0_5, %c0_6, %c0_7] : memref<1x97x221xf32, #tpu.memory_space<vmem>>, vector<1x97x221xf32>
    %8 = vector.shape_cast %7 : vector<1x97x221xf32> to vector<97x221xf32>
    %9 = vector.shape_cast %6 : vector<97x221xf32> to vector<1x97x221xf32>
    tpu.vector_store %arg4[%c0_5, %c0_6, %c0_7], %9 {strides = array<i32>} : memref<1x97x221xf32, #tpu.memory_space<vmem>>, vector<1x97x221xf32>,
    return
  }
  func.func @transform_0(%arg0: i32, %arg1: i32) -> (i32, i32) {
    %c0_i32 = arith.constant 0 : i32
    %c0_i32_0 = arith.constant 0 : i32
    %c0_i32_1 = arith.constant 0 : i32
    return %c0_i32, %c0_i32_0 : i32, i32
  }
  func.func @transform_1(%arg0: i32, %arg1: i32) -> (i32, i32, i32) {
    %c0_i32 = arith.constant 0 : i32
    %c0_i32_0 = arith.constant 0 : i32
    return %arg0, %c0_i32, %arg1 : i32, i32, i32
  }
  func.func @transform_2(%arg0: i32, %arg1: i32) -> (i32, i32, i32) {
    %c0_i32 = arith.constant 0 : i32
    %c0_i32_0 = arith.constant 0 : i32
    return %arg0, %c0_i32, %arg1 : i32, i32, i32
  }
}

</mosaic_0001>

<bundles_post_ra>
// kernel: tpu_custom_call.1
= control target key start
LH: loop header
LB: loop body
LE: loop exit
PB: predicated region body
PF: predicated region fallthrough
CT: control target
= control target key end

     0   :  { %s704_s9 = smov 0   ;;  %s706_s10 = smov 0   ;;  %s878_s0 = inlined_call_operand.vmem [shape: f32[97,113], index: 0, kind: input, shape index: {}]   ;;  %s879_s1 = inlined_call_operand.vmem [shape: f32[2,113,221], index: 1, kind: input, shape index: {}]   ;;  %s880_s2 = inlined_call_operand.vmem [shape: f32[2,97,221], index: 2, kind: output, shape index: {}]  }
   0x1   :  { %s708_s11 = smov 0  }
   0x2 LB: > { %s24_s12 = sadd.s32 1, %s682_s10  ;;  %p587_p0 = scmp.ge.s32.totalorder %s686_s11, 1  ;;  %s686_s11 = sphi %s708_s11, %s12_s11   ;;  %s682_s10 = sphi %s706_s10, %s882_s10   ;;  %s678_s9 = sphi %s704_s9, %s881_s9  }
   0x3   : > { %p26_p1 = scmp.ge.s32.totalorder %s24_s12, 2  ;;  %p133_p2 = scmp.lt.s32.totalorder %s686_s11, 3 }
   0x5   : > { %s884_s12 = smov (%p26_p1, %s24_s12), 0  ;;  %p134_p3 = pnand %p587_p0, %p133_p2 }
   0x6   : > { %p164_p4 = scmp.lt.s32.totalorder (!%p134_p3), %s678_s9, 1 }
   0x7   : > { %137 = sbr.rel (%p134_p3) target bundleno = 271 (0x10f), region = 28 }
   0xc   : > { %v688_v0 = vmov 0.0   ;;  %s886_s9 = smov (!%p164_p4, %s678_s9), 1  ;;  %vm266_vm0 = vcmask 1040384   ;;  %v183_v31 = vld [vmem:[%s878_s0] sm:$0xff]  ;;  %vm226_vm1 = vcmask 924672   ;;  %v190_v32 = vld [vmem:[%s878_s0 + $0x38] sm:$0xff] }
   0xd   : > { %337 = vmatprep.mubr.f32.mxu0 %v688_v0  ;;  %379 = vmatprep.mubr.f32.mxu1 %v688_v0  ;;  %s637_s13 = smul.u32 240, %s886_s9  ;;  %v184_v33 = vld [vmem:[%s878_s0 + $0x8] sm:$0xff]  ;;  %v191_v34 = vld [vmem:[%s878_s0 + $0x40] sm:$0xff]  ;;  %v185_v35 = vld [vmem:[%s878_s0 + $0x10] sm:$0xff]  ;;  %vm469_vm2 = vcmask 760832   ;;  %vm494_vm3 = vcmask 753664  }
   0xe   : > { %v192_v36 = vld [vmem:[%s878_s0 + $0x48] sm:$0xff]  ;;  %v186_v37 = vld [vmem:[%s878_s0 + $0x18] sm:$0xff]  ;;  %v193_v38 = vld [vmem:[%s878_s0 + $0x50] sm:$0xff]  ;;  %s638_s19 = smul.u32 208, %s886_s9 }
   0xf   : > { %s730_s16 = scalar_lea.vmem %s879_s1, %s637_s13  ;;  %v187_v39 = vld [vmem:[%s878_s0 + $0x20] sm:$0xff]  ;;  %v194_v40 = vld [vmem:[%s878_s0 + $0x58] sm:$0xff]  ;;  %v188_v41 = vld [vmem:[%s878_s0 + $0x28] sm:$0xff] }
  0x10   : > { %v225_v1 = vld [vmem:[%s730_s16 + $0xe8] sm:$0x1]  ;;  %v224_v2 = vld [vmem:[%s730_s16 + $0xe0] sm:$0x1]  ;;  %v223_v3 = vld [vmem:[%s730_s16 + $0xd8] sm:$0xff]  ;;  %s829_s22 = scalar_lea.vmem %s880_s2, %s638_s19 }
  0x11   : > { %590 = vmatprep.subr.msk.mxu0 %vm266_vm0, %v225_v1  ;;  %607 = vmatprep.subr.msk.mxu1 %vm266_vm0, %v225_v1  ;;  %v222_v4 = vld [vmem:[%s730_s16 + $0xd0] sm:$0xff]  ;;  %v221_v5 = vld [vmem:[%s730_s16 + $0xc8] sm:$0xff]  ;;  %v220_v6 = vld [vmem:[%s730_s16 + $0xc0] sm:$0xff] }
  0x12   : > { %591 = vmatpush1.msk.msra.mxu0 %vm266_vm0, %v224_v2  ;;  %622 = vmatpush1.msk.msra.mxu1 %vm266_vm0, %v224_v2  ;;  %v219_v7 = vld [vmem:[%s730_s16 + $0xb8] sm:$0xff]  ;;  %v218_v8 = vld [vmem:[%s730_s16 + $0xb0] sm:$0xff]  ;;  %v217_v9 = vld [vmem:[%s730_s16 + $0xa8] sm:$0xff] }
  0x13   : > { %277 = vmatprep.subr.mxu0 %v223_v3  ;;  %608 = vmatprep.subr.mxu1 %v223_v3  ;;  %v216_v10 = vld [vmem:[%s730_s16 + $0xa0] sm:$0xff]  ;;  %v215_v11 = vld [vmem:[%s730_s16 + $0x98] sm:$0xff]  ;;  %v214_v12 = vld [vmem:[%s730_s16 + $0x90] sm:$0xff] }
  0x14   : > { %278 = vmatpush1.msra.mxu0 %v222_v4  ;;  %623 = vmatpush1.msra.mxu1 %v222_v4  ;;  %v213_v13 = vld [vmem:[%s730_s16 + $0x88] sm:$0xff]  ;;  %v212_v14 = vld [vmem:[%s730_s16 + $0x80] sm:$0xff]  ;;  %v211_v15 = vld [vmem:[%s730_s16 + $0x78] sm:$0xff] }
  0x15   : > { %279 = vmatprep.subr.mxu0 %v221_v5  ;;  %609 = vmatprep.subr.mxu1 %v221_v5  ;;  %v210_v16 = vld [vmem:[%s730_s16 + $0x70] sm:$0xff]  ;;  %v209_v17 = vld [vmem:[%s730_s16 + $0x68] sm:$0xff]  ;;  %v208_v18 = vld [vmem:[%s730_s16 + $0x60] sm:$0xff] }
  0x16   : > { %280 = vmatpush1.msra.mxu0 %v220_v6  ;;  %624 = vmatpush1.msra.mxu1 %v220_v6  ;;  %v207_v19 = vld [vmem:[%s730_s16 + $0x58] sm:$0xff]  ;;  %v206_v20 = vld [vmem:[%s730_s16 + $0x50] sm:$0xff]  ;;  %v205_v21 = vld [vmem:[%s730_s16 + $0x48] sm:$0xff] }
  0x17   : > { %281 = vmatprep.subr.mxu0 %v219_v7  ;;  %610 = vmatprep.subr.mxu1 %v219_v7  ;;  %v204_v22 = vld [vmem:[%s730_s16 + $0x40] sm:$0xff]  ;;  %v203_v23 = vld [vmem:[%s730_s16 + $0x38] sm:$0xff]  ;;  %v202_v24 = vld [vmem:[%s730_s16 + $0x30] sm:$0xff] }
  0x18   : > { %282 = vmatpush1.msra.mxu0 %v218_v8  ;;  %625 = vmatpush1.msra.mxu1 %v218_v8  ;;  %v201_v25 = vld [vmem:[%s730_s16 + $0x28] sm:$0xff]  ;;  %v200_v26 = vld [vmem:[%s730_s16 + $0x20] sm:$0xff]  ;;  %v199_v27 = vld [vmem:[%s730_s16 + $0x18] sm:$0xff] }
  0x19   : > { %283 = vmatprep.subr.mxu0 %v217_v9  ;;  %611 = vmatprep.subr.mxu1 %v217_v9  ;;  %v198_v28 = vld [vmem:[%s730_s16 + $0x10] sm:$0xff]  ;;  %v197_v29 = vld [vmem:[%s730_s16 + $0x8] sm:$0xff]  ;;  %v196_v30 = vld [vmem:[%s730_s16] sm:$0xff] }
  0x1a   : > { %284 = vmatpush1.msra.mxu0 %v216_v10  ;;  %626 = vmatpush1.msra.mxu1 %v216_v10  ;;  %v195_v42 = vld [vmem:[%s878_s0 + $0x60] sm:$0x1]  ;;  %v189_v43 = vld [vmem:[%s878_s0 + $0x30] sm:$0xff] }
  0x1b   : > { %285 = vmatprep.subr.mxu0 %v215_v11  ;;  %612 = vmatprep.subr.mxu1 %v215_v11 }
  0x1c   : > { %286 = vmatpush1.msra.mxu0 %v214_v12  ;;  %627 = vmatpush1.msra.mxu1 %v214_v12 }
  0x1d   : > { %287 = vmatprep.subr.mxu0 %v213_v13  ;;  %613 = vmatprep.subr.mxu1 %v213_v13 }
  0x1e   : > { %288 = vmatpush1.msra.mxu0 %v212_v14  ;;  %628 = vmatpush1.msra.mxu1 %v212_v14 }
  0x1f   : > { %289 = vmatprep.subr.mxu0 %v211_v15  ;;  %614 = vmatprep.subr.mxu1 %v211_v15 }
  0x20   : > { %290 = vmatpush1.msra.mxu0 %v210_v16  ;;  %629 = vmatpush1.msra.mxu1 %v210_v16 }
  0x21   : > { %291 = vmatprep.subr.mxu0 %v209_v17  ;;  %615 = vmatprep.subr.mxu1 %v209_v17 }
  0x22   : > { %292 = vmatpush1.msra.mxu0 %v208_v18  ;;  %630 = vmatpush1.msra.mxu1 %v208_v18 }
  0x23   : > { %293 = vmatprep.subr.mxu0 %v207_v19  ;;  %616 = vmatprep.subr.mxu1 %v207_v19 }
  0x24   : > { %294 = vmatpush1.msra.mxu0 %v206_v20  ;;  %631 = vmatpush1.msra.mxu1 %v206_v20 }
  0x25   : > { %295 = vmatprep.subr.mxu0 %v205_v21  ;;  %617 = vmatprep.subr.mxu1 %v205_v21 }
  0x26   : > { %296 = vmatpush1.msra.mxu0 %v204_v22  ;;  %632 = vmatpush1.msra.mxu1 %v204_v22 }
  0x27   : > { %297 = vmatprep.subr.mxu0 %v203_v23  ;;  %618 = vmatprep.subr.mxu1 %v203_v23 }
  0x28   : > { %298 = vmatpush1.msra.mxu0 %v202_v24  ;;  %633 = vmatpush1.msra.mxu1 %v202_v24 }
  0x29   : > { %299 = vmatprep.subr.mxu0 %v201_v25  ;;  %619 = vmatprep.subr.mxu1 %v201_v25 }
  0x2a   : > { %300 = vmatpush1.msra.mxu0 %v200_v26  ;;  %634 = vmatpush1.msra.mxu1 %v200_v26 }
  0x2b   : > { %301 = vmatprep.subr.mxu0 %v199_v27  ;;  %620 = vmatprep.subr.mxu1 %v199_v27 }
  0x2c   : > { %302 = vmatpush1.msra.mxu0 %v198_v28  ;;  %635 = vmatpush1.msra.mxu1 %v198_v28 }
  0x2d   : > { %303 = vmatprep.subr.mxu0 %v197_v29  ;;  %621 = vmatprep.subr.mxu1 %v197_v29 }
  0x2e   : > { %304 = vmatpush1.msra.mxu0 %v196_v30  ;;  %636 = vmatpush1.msra.mxu1 %v196_v30 }
  0x2f   : > { %592 = vmatmul.mubr.msk.f32.vlgmr.msra.gmra.mxu0 %vm226_vm1, %v183_v31  ;;  %599 = vmatmul.mubr.msk.f32.vlgmr.msra.gmra.mxu1 %vm226_vm1, %v190_v32 }
  0x30   : > { %343 = vmatprep.mubr.f32.mxu0 %v688_v0  ;;  %385 = vmatprep.mubr.f32.mxu1 %v688_v0 }
  0x33   : > { %593 = vmatmul.mubr.msk.f32.gmra.mxu0 %vm226_vm1, %v184_v33  ;;  %600 = vmatmul.mubr.msk.f32.gmra.mxu1 %vm226_vm1, %v191_v34 }
  0x34   : > { %349 = vmatprep.mubr.f32.mxu0 %v688_v0  ;;  %391 = vmatprep.mubr.f32.mxu1 %v688_v0 }
  0x37   : > { %594 = vmatmul.mubr.msk.f32.gmra.mxu0 %vm226_vm1, %v185_v35  ;;  %601 = vmatmul.mubr.msk.f32.gmra.mxu1 %vm226_vm1, %v192_v36 }
  0x38   : > { %355 = vmatprep.mubr.f32.mxu0 %v688_v0  ;;  %397 = vmatprep.mubr.f32.mxu1 %v688_v0 }
  0x3b   : > { %595 = vmatmul.mubr.msk.f32.gmra.mxu0 %vm226_vm1, %v186_v37  ;;  %602 = vmatmul.mubr.msk.f32.gmra.mxu1 %vm226_vm1, %v193_v38 }
  0x3c   : > { %361 = vmatprep.mubr.f32.mxu0 %v688_v0  ;;  %403 = vmatprep.mubr.f32.mxu1 %v688_v0 }
  0x3f   : > { %596 = vmatmul.mubr.msk.f32.gmra.mxu0 %vm226_vm1, %v187_v39  ;;  %603 = vmatmul.mubr.msk.f32.gmra.mxu1 %vm226_vm1, %v194_v40 }
  0x40   : > { %367 = vmatprep.mubr.f32.mxu0 %v688_v0  ;;  %409 = vmatprep.mubr.f32.mxu1 %v688_v0 }
  0x43   : > { %597 = vmatmul.mubr.msk.f32.gmra.mxu0 %vm226_vm1, %v188_v41  ;;  %604 = vmatmul.mubr.msk.f32.gmra.mxu1 %vm226_vm1, %v195_v42 }
  0x44   : > { %373 = vmatprep.mubr.f32.mxu0 %v688_v0 }
  0x47   : > { %598 = vmatmul.mubr.msk.f32.gmra.mxu0 %vm226_vm1, %v189_v43 }
  0xef   : > { %v339_v44 = vpop.f32.mrf.mxu0  ;;  %v381_v45 = vpop.f32.mrf.mxu1 }
  0xf0   : > { %v416_v46 = vmul.f32 -0.6, %v339_v44  ;;  %v430_v47 = vmul.f32 -0.6, %v381_v45 }
  0xf1   : > { %v341_v48 = vpop.f32.mrf.mxu0  ;;  %v383_v49 = vpop.f32.mrf.mxu1 }
  0xf2   : > { %v442_v50 = vmax.f32 %v339_v44, %v416_v46  ;;  %v456_v51 = vmax.f32 %v381_v45, %v430_v47  ;;  %v417_v52 = vmul.f32 -0.6, %v341_v48  ;;  %v431_v53 = vmul.f32 -0.6, %v383_v49 }
  0xf3   : > { %v345_v54 = vpop.f32.mrf.mxu0  ;;  %v387_v55 = vpop.f32.mrf.mxu1 }
  0xf4   : > { %468 = vst [vmem:[%s829_s22] sm:$0xff] %v442_v50  ;;  %483 = vst [vmem:[%s829_s22 + $0x70] sm:$0xff] %v456_v51  ;;  %v443_v56 = vmax.f32 %v341_v48, %v417_v52  ;;  %v457_v57 = vmax.f32 %v383_v49, %v431_v53  ;;  %v418_v58 = vmul.f32 -0.6, %v345_v54  ;;  %v432_v59 = vmul.f32 -0.6, %v387_v55 }
  0xf5   : > { %v347_v60 = vpop.f32.mrf.mxu0  ;;  %v389_v61 = vpop.f32.mrf.mxu1 }
  0xf6   : > { %470 = vst.msk [vmem:[%s829_s22 + $0x8] sm:$0xff] %vm469_vm2, %v443_v56  ;;  %484 = vst.msk [vmem:[%s829_s22 + $0x78] sm:$0xff] %vm469_vm2, %v457_v57  ;;  %v444_v62 = vmax.f32 %v345_v54, %v418_v58  ;;  %v458_v63 = vmax.f32 %v387_v55, %v432_v59  ;;  %v419_v0 = vmul.f32 -0.6, %v347_v60  ;;  %v433_v1 = vmul.f32 -0.6, %v389_v61 }
  0xf7   : > { %v351_v2 = vpop.f32.mrf.mxu0  ;;  %v393_v3 = vpop.f32.mrf.mxu1 }
  0xf8   : > { %471 = vst [vmem:[%s829_s22 + $0x10] sm:$0xff] %v444_v62  ;;  %485 = vst [vmem:[%s829_s22 + $0x80] sm:$0xff] %v458_v63  ;;  %v445_v4 = vmax.f32 %v347_v60, %v419_v0  ;;  %v459_v5 = vmax.f32 %v389_v61, %v433_v1  ;;  %v420_v6 = vmul.f32 -0.6, %v351_v2  ;;  %v434_v7 = vmul.f32 -0.6, %v393_v3 }
  0xf9   : > { %v353_v8 = vpop.f32.mrf.mxu0  ;;  %v395_v9 = vpop.f32.mrf.mxu1 }
  0xfa   : > { %472 = vst.msk [vmem:[%s829_s22 + $0x18] sm:$0xff] %vm469_vm2, %v445_v4  ;;  %486 = vst.msk [vmem:[%s829_s22 + $0x88] sm:$0xff] %vm469_vm2, %v459_v5  ;;  %v446_v10 = vmax.f32 %v351_v2, %v420_v6  ;;  %v460_v11 = vmax.f32 %v393_v3, %v434_v7  ;;  %v421_v12 = vmul.f32 -0.6, %v353_v8  ;;  %v435_v13 = vmul.f32 -0.6, %v395_v9 }
  0xfb   : > { %v357_v14 = vpop.f32.mrf.mxu0  ;;  %v399_v15 = vpop.f32.mrf.mxu1 }
  0xfc   : > { %473 = vst [vmem:[%s829_s22 + $0x20] sm:$0xff] %v446_v10  ;;  %487 = vst [vmem:[%s829_s22 + $0x90] sm:$0xff] %v460_v11  ;;  %v447_v16 = vmax.f32 %v353_v8, %v421_v12  ;;  %v461_v17 = vmax.f32 %v395_v9, %v435_v13  ;;  %v422_v18 = vmul.f32 -0.6, %v357_v14  ;;  %v436_v19 = vmul.f32 -0.6, %v399_v15 }
  0xfd   : > { %v359_v20 = vpop.f32.mrf.mxu0  ;;  %v401_v21 = vpop.f32.mrf.mxu1 }
  0xfe   : > { %474 = vst.msk [vmem:[%s829_s22 + $0x28] sm:$0xff] %vm469_vm2, %v447_v16  ;;  %488 = vst.msk [vmem:[%s829_s22 + $0x98] sm:$0xff] %vm469_vm2, %v461_v17  ;;  %v448_v22 = vmax.f32 %v357_v14, %v422_v18  ;;  %v462_v23 = vmax.f32 %v399_v15, %v436_v19  ;;  %v423_v24 = vmul.f32 -0.6, %v359_v20  ;;  %v437_v25 = vmul.f32 -0.6, %v401_v21 }
  0xff   : > { %v363_v26 = vpop.f32.mrf.mxu0  ;;  %v405_v27 = vpop.f32.mrf.mxu1 }
 0x100   : > { %475 = vst [vmem:[%s829_s22 + $0x30] sm:$0xff] %v448_v22  ;;  %489 = vst [vmem:[%s829_s22 + $0xa0] sm:$0xff] %v462_v23  ;;  %v449_v28 = vmax.f32 %v359_v20, %v423_v24  ;;  %v463_v29 = vmax.f32 %v401_v21, %v437_v25  ;;  %v424_v30 = vmul.f32 -0.6, %v363_v26  ;;  %v438_v31 = vmul.f32 -0.6, %v405_v27 }
 0x101   : > { %v365_v32 = vpop.f32.mrf.mxu0  ;;  %v407_v33 = vpop.f32.mrf.mxu1 }
 0x102   : > { %476 = vst.msk [vmem:[%s829_s22 + $0x38] sm:$0xff] %vm469_vm2, %v449_v28  ;;  %490 = vst.msk [vmem:[%s829_s22 + $0xa8] sm:$0xff] %vm469_vm2, %v463_v29  ;;  %v450_v34 = vmax.f32 %v363_v26, %v424_v30  ;;  %v464_v35 = vmax.f32 %v405_v27, %v438_v31  ;;  %v425_v36 = vmul.f32 -0.6, %v365_v32  ;;  %v439_v37 = vmul.f32 -0.6, %v407_v33 }
 0x103   : > { %v369_v38 = vpop.f32.mrf.mxu0  ;;  %v411_v39 = vpop.f32.mrf.mxu1 }
 0x104   : > { %477 = vst [vmem:[%s829_s22 + $0x40] sm:$0xff] %v450_v34  ;;  %491 = vst [vmem:[%s829_s22 + $0xb0] sm:$0xff] %v464_v35  ;;  %v451_v40 = vmax.f32 %v365_v32, %v425_v36  ;;  %v465_v41 = vmax.f32 %v407_v33, %v439_v37  ;;  %v426_v42 = vmul.f32 -0.6, %v369_v38  ;;  %v440_v43 = vmul.f32 -0.6, %v411_v39 }
 0x105   : > { %v371_v44 = vpop.f32.mrf.mxu0  ;;  %v413_v45 = vpop.f32.mrf.mxu1 }
 0x106   : > { %478 = vst.msk [vmem:[%s829_s22 + $0x48] sm:$0xff] %vm469_vm2, %v451_v40  ;;  %492 = vst.msk [vmem:[%s829_s22 + $0xb8] sm:$0xff] %vm469_vm2, %v465_v41  ;;  %v452_v46 = vmax.f32 %v369_v38, %v426_v42  ;;  %v466_v47 = vmax.f32 %v411_v39, %v440_v43  ;;  %v427_v48 = vmul.f32 -0.6, %v371_v44  ;;  %v441_v49 = vmul.f32 -0.6, %v413_v45 }
 0x107   : > { %v375_v50 = vpop.f32.mrf.mxu0 }
 0x108   : > { %479 = vst [vmem:[%s829_s22 + $0x50] sm:$0xff] %v452_v46  ;;  %493 = vst [vmem:[%s829_s22 + $0xc0] sm:$0x1] %v466_v47  ;;  %v453_v51 = vmax.f32 %v371_v44, %v427_v48  ;;  %v467_v52 = vmax.f32 %v413_v45, %v441_v49  ;;  %v428_v53 = vmul.f32 -0.6, %v375_v50 }
 0x109   : > { %v377_v54 = vpop.f32.mrf.mxu0 }
 0x10a   : > { %480 = vst.msk [vmem:[%s829_s22 + $0x58] sm:$0xff] %vm469_vm2, %v453_v51  ;;  %v454_v55 = vmax.f32 %v375_v50, %v428_v53  ;;  %v429_v56 = vmul.f32 -0.6, %v377_v54 }
 0x10b   : > { %495 = vst.msk [vmem:[%s829_s22 + $0xc8] sm:$0x1] %vm494_vm3, %v467_v52 }
 0x10c   : > { %481 = vst [vmem:[%s829_s22 + $0x60] sm:$0xff] %v454_v55  ;;  %v455_v57 = vmax.f32 %v377_v54, %v429_v56 }
 0x10e   : > { %482 = vst.msk [vmem:[%s829_s22 + $0x68] sm:$0xff] %vm469_vm2, %v455_v57 }
 0x10f PF: > { %s12_s11 = sadd.s32 1, %s686_s11   ;;  %s881_s9 = smov %s682_s10 }
 0x110   : > { %p9_p5 = scmp.ge.s32.totalorder %s12_s11, 4   ;;  %s882_s10 = smov %s884_s12 }
 0x112   :  { %11 = sbr.rel (!%p9_p5) target bundleno = 2 (0x2), region = 58 }

</bundles_post_ra>
